<compile_context>
chip_gen: v6e
topology: v6e:2x2x1
jax: 0.10.0
libtpu: 0.0.40
codegen_flags: <defaults>
</compile_context>

<pallas_src>
import jax
import jax.numpy as jnp
from jax.experimental import pallas as pl
from jax.experimental.pallas import tpu as pltpu

LANES = 128
_SMALL_ROWS = 64  # below this (N < 8192) the plain-jnp fast path wins


def rotor_kernel(cs_ref, x_ref, y_ref, xo_ref, yo_ref):
    # cs_ref: SMEM f32[2] = [cos(theta), sin(theta)]  (scalars, read once)
    # x_ref / y_ref / xo_ref / yo_ref: VMEM (tm, 128) f32 tiles.
    c = cs_ref[0]
    s = cs_ref[1]
    x = x_ref[...]
    y = y_ref[...]
    xo_ref[...] = x * c + y * s       # column 0 of xy @ rotmat
    yo_ref[...] = y * c - x * s       # column 1 of xy @ rotmat


def _rotate_jnp(c, s, x, y):
    return x * c + y * s, y * c - x * s


def rotor_forward(theta, x, y, *, tile_rows=2048):
    """theta: scalar float32; x, y: [N, 1] float32 -> (x_out, y_out) each [N, 1]."""
    N = x.shape[0]

    # Hoist the transcendentals: cos/sin of one scalar, computed once.
    theta = jnp.asarray(theta, dtype=jnp.float32)
    c = jnp.cos(theta)
    s = jnp.sin(theta)

    x = x.astype(jnp.float32)
    y = y.astype(jnp.float32)

    rows = -(-N // LANES)                         # ceil(N / 128)

    # --- small-N fast path: launch/packing overhead dwarfs the transfer ---
    if rows < _SMALL_ROWS:
        xo, yo = _rotate_jnp(c, s, x, y)
        return xo, yo

    # --- lane-dense packing: pad N up to rows_p*128, rows_p multiple of 8 ---
    rows_p = -(-rows // 8) * 8                    # sublane-align rows only
    P = rows_p * LANES

    def lane_dense(v):
        flat = jnp.reshape(v, (-1,))
        if P != N:
            flat = jnp.pad(flat, (0, P - N))
        return jnp.reshape(flat, (rows_p, LANES))

    x2d = lane_dense(x)
    y2d = lane_dense(y)

    # Tile selection: big tiles to amortize per-step overhead, but keep the
    # grid >= ~4 steps so v7x's two TensorCores both get work.
    tm = min(tile_rows, max(8, (rows_p // 4) // 8 * 8))
    tm = min(tm, rows_p)
    grid = (pl.cdiv(rows_p, tm),)                 # masked partial last block

    # Double-buffered VMEM footprint: (2 in + 2 out) * 2 bufs * tm*128*4 B.
    block_bytes = tm * LANES * 4
    vmem_limit = max(16 << 20, 4 * 2 * block_bytes + (4 << 20))

    cs = jnp.stack([c, s]).astype(jnp.float32)    # (2,) scalars for SMEM

    xo2d, yo2d = pl.pallas_call(
        rotor_kernel,
        out_shape=(
            jax.ShapeDtypeStruct((rows_p, LANES), jnp.float32),
            jax.ShapeDtypeStruct((rows_p, LANES), jnp.float32),
        ),
        grid=grid,
        in_specs=[
            # [cos, sin] live in SMEM -- no VMEM tile / per-step DMA for them.
            pl.BlockSpec(memory_space=pltpu.MemorySpace.SMEM),
            pl.BlockSpec((tm, LANES), lambda i: (i, 0)),
            pl.BlockSpec((tm, LANES), lambda i: (i, 0)),
        ],
        out_specs=(
            pl.BlockSpec((tm, LANES), lambda i: (i, 0)),
            pl.BlockSpec((tm, LANES), lambda i: (i, 0)),
        ),
        compiler_params=pltpu.CompilerParams(
            dimension_semantics=("parallel",),
            vmem_limit_bytes=vmem_limit,
        ),
    )(cs, x2d, y2d)

    # Drop the padding and restore the module's [N, 1] layout.
    x_out = jnp.reshape(xo2d, (-1,))[:N].reshape(N, 1)
    y_out = jnp.reshape(yo2d, (-1,))[:N].reshape(N, 1)
    return x_out, y_out


def rotor_reference(theta, x, y):
    """Pure-JAX reference mirroring the PyTorch forward."""
    xy = jnp.concatenate([x, y], axis=-1)                      # [N, 2]
    c, s = jnp.cos(theta), jnp.sin(theta)
    rotmat = jnp.array([[c, -s], [s, c]], dtype=jnp.float32)   # [2, 2]
    xy = xy @ rotmat
    return xy[:, 0:1], xy[:, 1:2]


if __name__ == "__main__":
    key = jax.random.PRNGKey(0)
    init_theta = 0.5                         # deterministic parameter init
    theta = jnp.float32(init_theta)

    ok = True
    # 8 / 300 hit the small-N fast path; 20000 exercises the Pallas kernel
    # (rows_p=160, tm=40, 4 grid steps, masked tail padding).
    for N in (8, 300, 20000):
        kx, ky = jax.random.split(jax.random.fold_in(key, N))
        x = jax.random.normal(kx, (N, 1), dtype=jnp.float32)
        y = jax.random.normal(ky, (N, 1), dtype=jnp.float32)

        x_out, y_out = rotor_forward(theta, x, y)
        jax.block_until_ready((x_out, y_out))

        x_ref, y_ref = rotor_reference(theta, x, y)
        ok &= x_out.shape == (N, 1) and y_out.shape == (N, 1)
        ok &= bool(jnp.allclose(x_out, x_ref, atol=1e-5, rtol=1e-5))
        ok &= bool(jnp.allclose(y_out, y_ref, atol=1e-5, rtol=1e-5))

    assert ok
    print("KERNEL_OK")
</pallas_src>

<mosaic_0001>
module attributes {stable_mosaic.version = 11 : i64} {
  func.func @rotor_kernel(%arg0: i32, %arg1: memref<2xf32, #tpu.memory_space<smem>>, %arg2: memref<40x128xf32, #tpu.memory_space<vmem>>, %arg3: memref<40x128xf32, #tpu.memory_space<vmem>>, %arg4: memref<40x128xf32, #tpu.memory_space<vmem>>, %arg5: memref<40x128xf32, #tpu.memory_space<vmem>>) attributes {dimension_semantics = [#tpu.dimension_semantics<parallel>], iteration_bounds = array<i64: 4>, scalar_prefetch = 0 : i64, scratch_operands = 0 : i64, tpu.core_type = #tpu.core_type<tc>, window_params = [{transform_indices = @transform_0, window_bounds = array<i64: 2>}, {transform_indices = @transform_1, window_bounds = array<i64: 40, 128>}, {transform_indices = @transform_2, window_bounds = array<i64: 40, 128>}, {transform_indices = @transform_3, window_bounds = array<i64: 40, 128>}, {transform_indices = @transform_4, window_bounds = array<i64: 40, 128>}]} {
    %c0 = arith.constant 0 : index
    %0 = memref.load %arg1[%c0] : memref<2xf32, #tpu.memory_space<smem>>
    %c1 = arith.constant 1 : index
    %1 = memref.load %arg1[%c1] : memref<2xf32, #tpu.memory_space<smem>>
    %c0_0 = arith.constant 0 : index
    %c0_1 = arith.constant 0 : index
    %2 = vector.load %arg2[%c0_0, %c0_1] : memref<40x128xf32, #tpu.memory_space<vmem>>, vector<40x128xf32>
    %c0_2 = arith.constant 0 : index
    %c0_3 = arith.constant 0 : index
    %3 = vector.load %arg3[%c0_2, %c0_3] : memref<40x128xf32, #tpu.memory_space<vmem>>, vector<40x128xf32>
    %4 = vector.broadcast %0 : f32 to vector<40x128xf32>
    %5 = arith.mulf %2, %4 : vector<40x128xf32>
    %6 = vector.broadcast %1 : f32 to vector<40x128xf32>
    %7 = arith.mulf %3, %6 : vector<40x128xf32>
    %8 = arith.addf %5, %7 : vector<40x128xf32>
    %c0_4 = arith.constant 0 : index
    %c0_5 = arith.constant 0 : index
    %9 = vector.load %arg4[%c0_4, %c0_5] : memref<40x128xf32, #tpu.memory_space<vmem>>, vector<40x128xf32>
    tpu.vector_store %arg4[%c0_4, %c0_5], %8 {strides = array<i32>} : memref<40x128xf32, #tpu.memory_space<vmem>>, vector<40x128xf32>,
    %10 = vector.broadcast %0 : f32 to vector<40x128xf32>
    %11 = arith.mulf %3, %10 : vector<40x128xf32>
    %12 = vector.broadcast %1 : f32 to vector<40x128xf32>
    %13 = arith.mulf %2, %12 : vector<40x128xf32>
    %14 = arith.subf %11, %13 : vector<40x128xf32>
    %c0_6 = arith.constant 0 : index
    %c0_7 = arith.constant 0 : index
    %15 = vector.load %arg5[%c0_6, %c0_7] : memref<40x128xf32, #tpu.memory_space<vmem>>, vector<40x128xf32>
    tpu.vector_store %arg5[%c0_6, %c0_7], %14 {strides = array<i32>} : memref<40x128xf32, #tpu.memory_space<vmem>>, vector<40x128xf32>,
    return
  }
  func.func @transform_0(%arg0: i32) -> i32 {
    %c0_i32 = arith.constant 0 : i32
    %c0_i32_0 = arith.constant 0 : i32
    return %c0_i32 : i32
  }
  func.func @transform_1(%arg0: i32) -> (i32, i32) {
    %c0_i32 = arith.constant 0 : i32
    %c0_i32_0 = arith.constant 0 : i32
    return %arg0, %c0_i32 : i32, i32
  }
  func.func @transform_2(%arg0: i32) -> (i32, i32) {
    %c0_i32 = arith.constant 0 : i32
    %c0_i32_0 = arith.constant 0 : i32
    return %arg0, %c0_i32 : i32, i32
  }
  func.func @transform_3(%arg0: i32) -> (i32, i32) {
    %c0_i32 = arith.constant 0 : i32
    %c0_i32_0 = arith.constant 0 : i32
    return %arg0, %c0_i32 : i32, i32
  }
  func.func @transform_4(%arg0: i32) -> (i32, i32) {
    %c0_i32 = arith.constant 0 : i32
    %c0_i32_0 = arith.constant 0 : i32
    return %arg0, %c0_i32 : i32, i32
  }
}

</mosaic_0001>

<bundles_post_ra>
// kernel: tpu_custom_call.1
= control target key start
LH: loop header
LB: loop body
LE: loop exit
PB: predicated region body
PF: predicated region fallthrough
CT: control target
= control target key end

     0   :  { %s1097_s0 = inlined_call_operand.hbm [shape: f32[2], index: 0, kind: input, shape index: {}]   ;;  %s1098_s1 = inlined_call_operand.hbm [shape: f32[160,128], index: 1, kind: input, shape index: {}]   ;;  %s1099_s2 = inlined_call_operand.hbm [shape: f32[160,128], index: 2, kind: input, shape index: {}]   ;;  %s1100_s3 = inlined_call_operand.hbm [shape: f32[160,128], index: 3, kind: output, shape index: {0}]   ;;  %s1101_s4 = inlined_call_operand.hbm [shape: f32[160,128], index: 4, kind: output, shape index: {1}]  }
   0x1   :  { %1105 = sst [smem:[#allocation17_spill]] %s1097_s0 }
   0x2   :  { %10 = vsyncpa [#allocation5], 0 }
   0x3   :  { %11 = vsyncpa [#allocation3], 0 }
   0x4   :  { %13 = vsyncpa [#allocation3 + $0x1], 0 }
   0x5   :  { %14 = vsyncpa [#allocation8], 0 }
   0x6   :  { %16 = vsyncpa [#allocation8 + $0x1], 0 }
   0x7   :  { %17 = vsyncpa [#allocation4], 0 }
   0x8   :  { %19 = vsyncpa [#allocation4 + $0x1], 0 }
   0x9   :  { %20 = vsyncpa [#allocation11], 0 }
   0xa   :  { %22 = vsyncpa [#allocation11 + $0x1], 0  ;;  %s808_s15 = smov 0   ;;  %s810_s16 = smov 0  }
   0xb   :  { %s812_s17 = smov 0   ;;  %s814_s18 = smov 0  }
   0xc LB: > { %s829_s19 = sadd.s32 4294967295, %s772_s18   ;;  %s512_s20 = sadd.s32 4294967294, %s772_s18   ;;  %s772_s18 = sphi %s814_s18, %s1121_s18   ;;  %s768_s17 = sphi %s812_s17, %s1120_s17   ;;  %s764_s16 = sphi %s810_s16, %s1119_s16   ;;  %s760_s15 = sphi %s808_s15, %s1118_s15  }
   0xd   : > { %s833_s21 = sadd.s32 1, %s772_s18   ;;  %s56_s22 = sadd.s32 1, %s768_s17 }
   0xe   : > { %s53_s23 = ssub.s32 %s772_s18, %s833_s21  ;;  %p63_p0 = scmp.ne.s32.totalorder %s768_s17, %s764_s16 }
   0xf   : > { %p54_p1 = scmp.eq.s32.totalorder %s53_s23, 0  ;;  %p64_p2 = scmp.eq.s32.totalorder %s772_s18, 0 }
  0x10   : > { %p69_p3 = scmp.ne.s32.totalorder %s764_s16, %s760_s15  ;;  %p1102_p4 = scmp.eq.s32.totalorder %s829_s19, 0 }
  0x11   : > { %s845_s24 = scalar_select %p54_p1, %s768_s17, %s56_s22  }
  0x12   : > { %p847_p5 = por %p64_p2, %p63_p0  ;;  %p853_p6 = por %p1102_p4, %p69_p3 }
  0x13   : > { %p119_p7 = scmp.eq.s32.totalorder %s829_s19, 3  ;;  %p125_p8 = scmp.eq.s32.totalorder %s512_s20, 3 }
  0x14   : > { %s1107_s26 = scalar_select %p853_p6, 1, 0 }
  0x15   : > { %p513_p9 = scmp.ge.s32.totalorder %s772_s18, 1  ;;  %p158_p10 = scmp.lt.s32.totalorder %s772_s18, 5 }
  0x16   : > { %p860_p11 = por %p119_p7, %p63_p0  ;;  %p864_p12 = por %p125_p8, %p69_p3 }
  0x17   : > { %p868_p13 = pnand %p513_p9, %p158_p10  ;;  %p563_p2 = scmp.lt.s32.totalorder %s772_s18, 4 }
  0x18   : > { %s1108_s27 = scalar_select %p860_p11, 1, 0 }
  0x19   : > { %s1109_s28 = scalar_select %p864_p12, 1, 0 }
  0x1a   : > { %p544_p1 = pneg %p868_p13  ;;  %s876_s30 = sand.u32 1, %s768_s17  }
  0x1b   : > { %s525_s5 = smul.u32 640, %s772_s18  ;;  %p883_p3 = pnand %p563_p2, %p847_p5 }
  0x1c   : > { %p545_p0 = pnand %p544_p1, %p1102_p4  ;;  %s529_s7 = smul.u32 40, %s876_s30 }
  0x1d   : > { %s774_s8 = smov [#allocation2]   ;;  %s1112_s0 = sld [smem:[#allocation17_spill]] }
  0x1e   : > { %s896_s13 = scalar_lea.hbm %s1098_s1, %s525_s5  ;;  %s184_s14 = scalar_lea.vmem [#allocation6], %s529_s7 }
  0x1f   : > { %s191_s20 = sshll.u32 %s184_s14, 4  ;;  %s181_s22 = scalar_lea.sflag [#allocation3], %s876_s30  ;;  %s900_s20 = int_to_ptr.vmem [resolvable:$true] %s191_s20 }
  0x20   : > { %s614_s23 = scalar_lea.hbm %s896_s13, 640  ;;  %p616_p7 = pneg %p883_p3 }
  0x21   : > { %p615_p5 = scmp.ne.s32.totalorder %s896_s13, %s614_s23  ;;  %s619_s9 = scalar_lea.hbm %s1098_s1, 2560 }
  0x22   : > { %p620_p10 = scmp.lt.s32.totalorder %s896_s13, %s1098_s1  ;;  %p621_p1 = scmp.lt.s32.totalorder %s619_s9, %s614_s23 }
  0x23   : > { %547 = dma.hbm_to_smem (!%p545_p0), %s1112_s0, 16, %s774_s8, [#allocation5]  }
  0x24   : > { %p617_p8 = pnand %p616_p7, %p615_p5  ;;  %p622_p2 = por %p621_p1, %p620_p10 }
  0x26   : > { %p618_p9 = pneg %p617_p8 }
  0x28   : > { %p623_p0 = pnand %p622_p2, %p618_p9 }
  0x2a   : > { %626 = shalt.err (!%p623_p0)
}
  0x2b   : > { %s627_s12 = scalar_lea.vmem %s900_s20, 640  ;;  %s775_s14 = smov [#allocation6]  }
  0x2c   : > { %p628_p4 = scmp.ne.s32.totalorder %s900_s20, %s627_s12  ;;  %s632_s25 = sshll.u32 %s775_s14, 4  ;;  %s633_s25 = int_to_ptr.vmem [resolvable:$false] %s632_s25 }
  0x2d   : > { %s634_s8 = scalar_lea.vmem %s633_s25, 1280  ;;  %p635_p12 = scmp.lt.s32.totalorder %s900_s20, %s633_s25 }
  0x2e   : > { %p630_p5 = pnand %p628_p4, %p616_p7  ;;  %p636_p11 = scmp.lt.s32.totalorder %s634_s8, %s627_s12 }
  0x30   : > { %p631_p8 = pneg %p630_p5  ;;  %p637_p6 = por %p636_p11, %p635_p12 }
  0x32   : > { %p638_p10 = pnand %p637_p6, %p631_p8 }
  0x34   : > { %641 = shalt.err (!%p638_p10)
}
  0x35   : > { %s776_s23 = smov 128   ;;  %s777_s9 = smov 8  }
  0x36   : > { %551 = dma.hbm_to_vmem [thread:$0]  (!%p883_p3), %s896_s13, 640, %s900_s20, %s181_s22, %s776_s23, %s776_s23, %s777_s9  }
  0x37   : > { %s937_s12 = scalar_lea.hbm %s1099_s2, %s525_s5  ;;  %s205_s14 = scalar_lea.vmem [#allocation7], %s529_s7 }
  0x38   : > { %s212_s25 = sshll.u32 %s205_s14, 4  ;;  %s202_s8 = scalar_lea.sflag [#allocation8], %s876_s30  ;;  %s941_s25 = int_to_ptr.vmem [resolvable:$true] %s212_s25 }
  0x39   : > { %s642_s0 = scalar_lea.hbm %s937_s12, 640  ;;  %s647_s5 = scalar_lea.hbm %s1099_s2, 2560 }
  0x3a   : > { %p643_p4 = scmp.ne.s32.totalorder %s937_s12, %s642_s0  ;;  %p648_p12 = scmp.lt.s32.totalorder %s937_s12, %s1099_s2 }
  0x3b   : > { %p649_p9 = scmp.lt.s32.totalorder %s647_s5, %s642_s0 }
  0x3c   : > { %p645_p6 = pnand %p643_p4, %p616_p7 }
  0x3d   : > { %p650_p1 = por %p649_p9, %p648_p12 }
  0x3e   : > { %p646_p11 = pneg %p645_p6 }
  0x40   : > { %p651_p2 = pnand %p650_p1, %p646_p11 }
  0x42   : > { %654 = shalt.err (!%p651_p2)
}
  0x43   : > { %s655_s30 = scalar_lea.vmem %s941_s25, 640  ;;  %s778_s7 = smov [#allocation7]  }
  0x44   : > { %p656_p0 = scmp.ne.s32.totalorder %s941_s25, %s655_s30  ;;  %s660_s11 = sshll.u32 %s778_s7, 4  ;;  %s661_s11 = int_to_ptr.vmem [resolvable:$false] %s660_s11 }
  0x45   : > { %s662_s14 = scalar_lea.vmem %s661_s11, 1280  ;;  %p663_p10 = scmp.lt.s32.totalorder %s941_s25, %s661_s11 }
  0x46   : > { %p658_p5 = pnand %p656_p0, %p616_p7  ;;  %p664_p4 = scmp.lt.s32.totalorder %s662_s14, %s655_s30 }
  0x48   : > { %p659_p8 = pneg %p658_p5  ;;  %p665_p6 = por %p664_p4, %p663_p10 }
  0x4a   : > { %p666_p12 = pnand %p665_p6, %p659_p8 }
  0x4c   : > { %669 = shalt.err (!%p666_p12)
}
  0x4d   : > { %554 = dma.hbm_to_vmem [thread:$0]  (!%p883_p3), %s937_s12, 640, %s941_s25, %s202_s8, %s776_s23, %s776_s23, %s777_s9  }
  0x4e   : > { %224 = sbr.rel (%p868_p13) target bundleno = 143 (0x8f), region = 32  ;;  %p1113_p7 = scmp.eq.s32.totalorder (!%p868_p13), %s829_s19, 0 }
  0x53   : > { %739 = dma.done.wait (%p1113_p7), [#allocation5], 16   ;;  %p1114_p11 = pmov %p1113_p7 }
  0x54   : > { %s976_s0 = sand.u32 1, %s764_s16   ;;  %p1115_p3 = scmp.ne.s32.totalorder %s1107_s26, 0 }
  0x55   : > { %741 = vsyncadd (%p1114_p11), [#allocation5], 4294967280  ;;  %s979_s6 = smul.u32 40, %s976_s0  ;;  %s231_s13 = scalar_lea.sflag [#allocation3], %s976_s0 }
  0x57   : > { %s234_s23 = scalar_lea.vmem [#allocation6], %s979_s6 }
  0x58   : > { %743 = dma.done.wait (%p1115_p3), %s231_s13, 640  }
  0x59   : > { %745 = vsyncadd (%p1115_p3), %s231_s13, 4294966656  ;;  %s240_s29 = scalar_lea.sflag [#allocation8], %s976_s0  ;;  %s243_s9 = scalar_lea.vmem [#allocation7], %s979_s6 }
  0x5a   : > { %747 = dma.done.wait (%p1115_p3), %s240_s29, 640  }
  0x5b   : > { %749 = vsyncadd (%p1115_p3), %s240_s29, 4294966656 }
  0x5c   : > { %248 = sfence }
  0x5d   : > { %s283_s12 = sld [smem:[#allocation2]]  ;;  %v285_v0 = vld [vmem:[%s234_s23] sm:$0xff]  ;;  %v290_v1 = vld [vmem:[%s243_s9] sm:$0xff]  ;;  %v286_v2 = vld [vmem:[%s234_s23 + $0x8] sm:$0xff]  ;;  %s994_s8 = scalar_lea.vmem [#allocation9], %s979_s6 }
  0x5e   : > { %s520_s25 = sld [smem:[#allocation2 + $0x1]]  ;;  %v287_v3 = vld [vmem:[%s234_s23 + $0x10] sm:$0xff]  ;;  %v291_v4 = vld [vmem:[%s243_s9 + $0x8] sm:$0xff]  ;;  %v292_v5 = vld [vmem:[%s243_s9 + $0x10] sm:$0xff]  ;;  %s356_s20 = sshll.u32 %s994_s8, 4  ;;  %s998_s20 = int_to_ptr.vmem [resolvable:$true] %s356_s20 }
  0x5f   : > { %v288_v6 = vld [vmem:[%s234_s23 + $0x18] sm:$0xff]  ;;  %v293_v8 = vld [vmem:[%s243_s9 + $0x18] sm:$0xff]  ;;  %v289_v9 = vld [vmem:[%s234_s23 + $0x20] sm:$0xff]  ;;  %s527_s26 = smul.u32 640, %s829_s19  ;;  %s1001_s5 = scalar_lea.vmem [#allocation10], %s979_s6 }
  0x60   : > { %v294_v10 = vld [vmem:[%s243_s9 + $0x20] sm:$0xff]  ;;  %s372_s22 = sshll.u32 %s1001_s5, 4  ;;  %s338_s11 = scalar_lea.sflag [#allocation4], %s976_s0  ;;  %s1016_s22 = int_to_ptr.vmem [resolvable:$true] %s372_s22 }
  0x61   : > { %s1009_s7 = scalar_lea.hbm %s1100_s3, %s527_s26  ;;  %s670_s14 = scalar_lea.vmem %s998_s20, 640 }
  0x62   : > { %p671_p13 = scmp.ne.s32.totalorder %s998_s20, %s670_s14  ;;  %p1116_p9 = scmp.ne.s32.totalorder %s1108_s27, 0 }
  0x63   : > { %v295_v7 = vstv %s283_s12  ;;  %s779_s6 = smov [#allocation9]  }
  0x64   : > { %v296_v11 = vmul.f32 %v295_v7, %v285_v0  ;;  %v301_v12 = vstv %s520_s25  ;;  %v297_v13 = vmul.f32 %v295_v7, %v286_v2  ;;  %v298_v14 = vmul.f32 %v295_v7, %v287_v3  ;;  %p672_p1 = pnand %p671_p13, %p1116_p9  ;;  %s674_s13 = sshll.u32 %s779_s6, 4  ;;  %s675_s13 = int_to_ptr.vmem [resolvable:$false] %s674_s13 }
  0x65   : > { %v302_v15 = vmul.f32 %v301_v12, %v290_v1  ;;  %v303_v16 = vmul.f32 %v301_v12, %v291_v4  ;;  %v304_v17 = vmul.f32 %v301_v12, %v292_v5  ;;  %v299_v18 = vmul.f32 %v295_v7, %v288_v6  ;;  %s676_s23 = scalar_lea.vmem %s675_s13, 1280  ;;  %p677_p0 = scmp.lt.s32.totalorder %s998_s20, %s675_s13 }
  0x66   : > { %v305_v19 = vmul.f32 %v301_v12, %v293_v8  ;;  %v300_v20 = vmul.f32 %v295_v7, %v289_v9  ;;  %v306_v21 = vmul.f32 %v301_v12, %v294_v10  ;;  %v317_v22 = vmul.f32 %v295_v7, %v290_v1  ;;  %p673_p2 = pneg %p672_p1  ;;  %p678_p5 = scmp.lt.s32.totalorder %s676_s23, %s670_s14 }
  0x67   : > { %v307_v23 = vadd.f32 %v302_v15, %v296_v11  ;;  %v308_v24 = vadd.f32 %v303_v16, %v297_v13  ;;  %v309_v25 = vadd.f32 %v304_v17, %v298_v14  ;;  %v322_v26 = vmul.f32 %v301_v12, %v285_v0 }
  0x68   : > { %v310_v27 = vadd.f32 %v305_v19, %v299_v18  ;;  %v311_v28 = vadd.f32 %v306_v21, %v300_v20  ;;  %v318_v29 = vmul.f32 %v295_v7, %v291_v4  ;;  %v323_v30 = vmul.f32 %v301_v12, %v286_v2  ;;  %p679_p8 = por %p678_p5, %p677_p0 }
  0x69   : > { %312 = vst [vmem:[%s994_s8] sm:$0xff] %v307_v23  ;;  %313 = vst [vmem:[%s994_s8 + $0x8] sm:$0xff] %v308_v24  ;;  %v327_v31 = vsub.f32 %v317_v22, %v322_v26  ;;  %v319_v32 = vmul.f32 %v295_v7, %v292_v5  ;;  %v324_v33 = vmul.f32 %v301_v12, %v287_v3 }
  0x6a   : > { %314 = vst [vmem:[%s994_s8 + $0x10] sm:$0xff] %v309_v25  ;;  %v320_v34 = vmul.f32 %v295_v7, %v293_v8  ;;  %315 = vst [vmem:[%s994_s8 + $0x18] sm:$0xff] %v310_v27  ;;  %v328_v35 = vsub.f32 %v318_v29, %v323_v30  ;;  %v325_v36 = vmul.f32 %v301_v12, %v288_v6  ;;  %p680_p10 = pnand %p679_p8, %p673_p2 }
  0x6b   : > { %316 = vst [vmem:[%s994_s8 + $0x20] sm:$0xff] %v311_v28  ;;  %v321_v37 = vmul.f32 %v295_v7, %v294_v10  ;;  %v326_v38 = vmul.f32 %v301_v12, %v289_v9  ;;  %332 = vst [vmem:[%s1001_s5] sm:$0xff] %v327_v31  ;;  %v329_v39 = vsub.f32 %v319_v32, %v324_v33 }
  0x6c   : > { %683 = shalt.err (!%p680_p10)
}
  0x6d   : > { %s684_s29 = scalar_lea.hbm %s1009_s7, 640  ;;  %s688_s25 = scalar_lea.hbm %s1100_s3, 2560 }
  0x6e   : > { %p685_p4 = scmp.ne.s32.totalorder %s1009_s7, %s684_s29  ;;  %p689_p7 = scmp.lt.s32.totalorder %s1009_s7, %s1100_s3 }
  0x6f   : > { %p690_p11 = scmp.lt.s32.totalorder %s688_s25, %s684_s29 }
  0x70   : > { %p686_p6 = pnand %p685_p4, %p1116_p9 }
  0x71   : > { %p691_p3 = por %p690_p11, %p689_p7 }
  0x72   : > { %p687_p12 = pneg %p686_p6 }
  0x74   : > { %p692_p13 = pnand %p691_p3, %p687_p12 }
  0x76   : > { %695 = shalt.err (!%p692_p13)
}
  0x77   : > { %s780_s30 = smov 128   ;;  %s781_s14 = smov 8   ;;  %333 = vst [vmem:[%s1001_s5 + $0x8] sm:$0xff] %v328_v35  ;;  %v330_v40 = vsub.f32 %v320_v34, %v325_v36  ;;  %v331_v41 = vsub.f32 %v321_v37, %v326_v38  ;;  %334 = vst [vmem:[%s1001_s5 + $0x10] sm:$0xff] %v329_v39 }
  0x78   : > { %540 = dma.vmem_to_hbm [thread:$0]  (%p1116_p9), %s998_s20, 640, %s1009_s7, %s338_s11, %s780_s30, %s780_s30, %s781_s14  }
  0x79   : > { %s1051_s23 = scalar_lea.hbm %s1101_s4, %s527_s26  ;;  %335 = vst [vmem:[%s1001_s5 + $0x18] sm:$0xff] %v330_v40  ;;  %336 = vst [vmem:[%s1001_s5 + $0x20] sm:$0xff] %v331_v41  ;;  %s343_s29 = scalar_lea.sflag [#allocation11], %s976_s0 }
  0x7a   : > { %s696_s9 = scalar_lea.vmem %s1016_s22, 640  ;;  %s782_s20 = smov [#allocation10]  }
  0x7b   : > { %p697_p1 = scmp.ne.s32.totalorder %s1016_s22, %s696_s9  ;;  %s700_s7 = sshll.u32 %s782_s20, 4  ;;  %s701_s7 = int_to_ptr.vmem [resolvable:$false] %s700_s7 }
  0x7c   : > { %s702_s11 = scalar_lea.vmem %s701_s7, 1280  ;;  %p703_p5 = scmp.lt.s32.totalorder %s1016_s22, %s701_s7 }
  0x7d   : > { %p698_p2 = pnand %p697_p1, %p1116_p9  ;;  %p704_p8 = scmp.lt.s32.totalorder %s702_s11, %s696_s9 }
  0x7f   : > { %p699_p0 = pneg %p698_p2  ;;  %p705_p10 = por %p704_p8, %p703_p5 }
  0x81   : > { %p706_p4 = pnand %p705_p10, %p699_p0 }
  0x83   : > { %709 = shalt.err (!%p706_p4)
}
  0x84   : > { %s710_s19 = scalar_lea.hbm %s1051_s23, 640  ;;  %s714_s5 = scalar_lea.hbm %s1101_s4, 2560 }
  0x85   : > { %p711_p6 = scmp.ne.s32.totalorder %s1051_s23, %s710_s19  ;;  %p715_p11 = scmp.lt.s32.totalorder %s1051_s23, %s1101_s4 }
  0x86   : > { %p716_p3 = scmp.lt.s32.totalorder %s714_s5, %s710_s19 }
  0x87   : > { %p712_p12 = pnand %p711_p6, %p1116_p9 }
  0x88   : > { %p717_p13 = por %p716_p3, %p715_p11 }
  0x89   : > { %p713_p7 = pneg %p712_p12 }
  0x8b   : > { %p718_p1 = pnand %p717_p13, %p713_p7 }
  0x8d   : > { %721 = shalt.err (!%p718_p1)
}
  0x8e   : > { %541 = dma.vmem_to_hbm [thread:$0]  (%p1116_p9), %s1016_s22, 640, %s1051_s23, %s343_s29, %s780_s30, %s780_s30, %s781_s14  }
  0x8f PF: > { %p565_p2 = scmp.ge.s32.totalorder %s772_s18, 2  ;;  %s387_s8 = sand.u32 1, %s760_s15  }
  0x90   : > { %p1117_p0 = scmp.ne.s32.totalorder %s1109_s28, 0  ;;  %s388_s10 = scalar_lea.sflag [#allocation4], %s387_s8 }
  0x92   : > { %p556_p5 = pnand %p565_p2, %p1117_p0 }
  0x94   : > { %p557_p8 = pneg %p556_p5 }
  0x96   : > { %751 = dma.done.wait (%p557_p8), %s388_s10, 640  }
  0x97   : > { %753 = vsyncadd (%p557_p8), %s388_s10, 4294966656  ;;  %s397_s6 = scalar_lea.sflag [#allocation11], %s387_s8 }
  0x98   : > { %755 = dma.done.wait (%p557_p8), %s397_s6, 640  }
  0x99   : > { %757 = vsyncadd (%p557_p8), %s397_s6, 4294966656  ;;  %p25_p9 = scmp.ge.s32.totalorder %s833_s21, 6   ;;  %s1118_s15 = smov %s764_s16 }
  0x9a   : > { %s1119_s16 = smov %s768_s17  ;;  %s1120_s17 = smov %s845_s24 }
  0x9b   : > { %s1121_s18 = smov %s833_s21  ;;  %27 = sbr.rel (!%p25_p9) target bundleno = 12 (0xc), region = 112 }
  0xa0   :  { %402 = vsyncpa [#allocation3], 1 }
  0xa1   :  { %404 = vsyncpa [#allocation3 + $0x1], 1 }
  0xa2   :  { %405 = vsyncpa [#allocation8], 1 }
  0xa3   :  { %407 = vsyncpa [#allocation8 + $0x1], 1 }
  0xa4   :  { %408 = vsyncpa [#allocation4], 1 }
  0xa5   :  { %410 = vsyncpa [#allocation4 + $0x1], 1 }
  0xa6   :  { %411 = vsyncpa [#allocation11], 1 }
  0xa7   :  { %413 = vsyncpa [#allocation11 + $0x1], 1 }
  0xa8   :  { %414 = vsyncpa [#allocation5], 1 }
  0xa9   :  { %416 = vsyncpa [#allocation5 + $0x1], 1 }

</bundles_post_ra>
